<compile_context>
chip_gen: v7x
topology: tpu7x:2x2x1
jax: 0.10.0
libtpu: 0.0.40
codegen_flags: <defaults>
</compile_context>

<pallas_src>
import math

import jax
import jax.numpy as jnp
from jax.experimental import pallas as pl
from jax.experimental.pallas import tpu as pltpu

BN_EPS = 1e-5
BN_SCALE = 1.0 / math.sqrt(1.0 + BN_EPS)  # eval-mode BatchNorm1d, default running stats

LANE = 128
SUBLANE = 8


def _round_up(v, m):
    return ((v + m - 1) // m) * m


# ------------------------------ fused Pallas kernel ------------------------------

def fused_gin_kernel(a_ref, x_ref, pool_ref,
                     w1_ref, b1_ref, w2_ref, b2_ref, wo_ref, bo_ref,
                     o_ref, h_scr):
    """One grid step == one GIN layer + its pool/project contribution.

    a_ref    [Np, Np]   bf16   dense adjacency incl. (1+eps) self loops (resident)
    x_ref    [Np, P]    bf16   padded input node features (resident)
    pool_ref [Gp, Np]   bf16   one-hot pooling matrix (resident)
    w1/w2    [1, P, P]  bf16   this layer's MLP weights (BN folded into w1)
    b1/b2    [1, 1, P]  f32
    wo       [1, P, Op] bf16   this layer's output Linear
    bo       [1, 1, Op] f32
    o_ref    [Gp, Op]   f32    score_over_layer accumulator (resident output block)
    h_scr    [Np, P]    bf16   node features, persist across layers in VMEM
    """
    l = pl.program_id(0)

    @pl.when(l == 0)
    def _init():
        h_scr[...] = x_ref[...]
        o_ref[...] = jnp.zeros_like(o_ref)

    # GINConv aggregation: (1+eps)*x_i + sum_{j in N(i)} x_j  ==  A_plus @ h
    agg = jnp.dot(a_ref[...], h_scr[...], preferred_element_type=jnp.float32)

    # MLP: Linear (BN-eval scale folded into w1/b1) -> ReLU -> Linear
    h1 = jnp.dot(agg.astype(jnp.bfloat16), w1_ref[0],
                 preferred_element_type=jnp.float32) + b1_ref[0]
    h1 = jnp.maximum(h1, 0.0)
    h2 = jnp.dot(h1.astype(jnp.bfloat16), w2_ref[0],
                 preferred_element_type=jnp.float32) + b2_ref[0]
    h_bf16 = h2.astype(jnp.bfloat16)
    h_scr[...] = h_bf16

    # global_add_pool (P @ h) + per-layer output Linear, accumulated in the output block
    # (F.dropout is identity in eval mode)
    pooled = jnp.dot(pool_ref[...], h_bf16, preferred_element_type=jnp.float32)
    o_ref[...] += jnp.dot(pooled.astype(jnp.bfloat16), wo_ref[0],
                          preferred_element_type=jnp.float32) + bo_ref[0]
    # TODO(synk): training-mode dropout (random masking of the per-layer score) not modeled


# --------------------------------- model forward ---------------------------------

def gin_default_forward(packed, x, edge_index, batch, num_graphs):
    n, f_in = x.shape
    num_layers = packed["w1"].shape[0]
    p = packed["feat_pad"]
    o_pad = packed["out_pad"]

    # pad node count to a full lane so A / pool contraction dims are lane-dense
    n_pad = _round_up(max(n, LANE), LANE)
    g_pad = _round_up(num_graphs, SUBLANE)

    # glue: dense adjacency (scatter-add) + (1+eps) self loops, padded nodes are isolated
    src, dst = edge_index[0], edge_index[1]
    eps = 0.0
    adj = jnp.zeros((n_pad, n_pad), jnp.float32).at[dst, src].add(1.0)
    a_plus = adj.at[jnp.arange(n), jnp.arange(n)].add(1.0 + eps).astype(jnp.bfloat16)

    # glue: padded input features and one-hot pooling matrix (zero cols for padded nodes)
    x0 = jnp.zeros((n_pad, p), jnp.bfloat16).at[:n, :f_in].set(x.astype(jnp.bfloat16))
    pool_mat = jnp.zeros((g_pad, n_pad), jnp.bfloat16).at[batch, jnp.arange(n)].set(1.0)

    flops = 2 * num_layers * (n_pad * n_pad * p + 2 * n_pad * p * p
                              + g_pad * n_pad * p + g_pad * p * o_pad)
    bytes_accessed = (2 * (a_plus.size + x0.size + pool_mat.size)
                      + 2 * (packed["w1"].size + packed["w2"].size + packed["wo"].size)
                      + 4 * (packed["b1"].size + packed["b2"].size + packed["bo"].size)
                      + 4 * g_pad * o_pad)

    # TODO(synk): for large N, tile the A @ h aggregation with a (node-tile, k-tile) grid
    # sized for 64 MiB VMEM (v7x) and mark the row axis "parallel"; whole-array blocks
    # are only appropriate at these small graph sizes.
    out = pl.pallas_call(
        fused_gin_kernel,
        out_shape=jax.ShapeDtypeStruct((g_pad, o_pad), jnp.float32),
        grid_spec=pltpu.PrefetchScalarGridSpec(
            num_scalar_prefetch=0,
            grid=(num_layers,),
            in_specs=[
                pl.BlockSpec((n_pad, n_pad), lambda l: (0, 0)),     # A (resident)
                pl.BlockSpec((n_pad, p), lambda l: (0, 0)),         # x0 (resident)
                pl.BlockSpec((g_pad, n_pad), lambda l: (0, 0)),     # pool (resident)
                pl.BlockSpec((1, p, p), lambda l: (l, 0, 0)),       # w1[l]
                pl.BlockSpec((1, 1, p), lambda l: (l, 0, 0)),       # b1[l]
                pl.BlockSpec((1, p, p), lambda l: (l, 0, 0)),       # w2[l]
                pl.BlockSpec((1, 1, p), lambda l: (l, 0, 0)),       # b2[l]
                pl.BlockSpec((1, p, o_pad), lambda l: (l, 0, 0)),   # wo[l]
                pl.BlockSpec((1, 1, o_pad), lambda l: (l, 0, 0)),   # bo[l]
            ],
            out_specs=pl.BlockSpec((g_pad, o_pad), lambda l: (0, 0)),
            scratch_shapes=[pltpu.VMEM((n_pad, p), jnp.bfloat16)],
        ),
        compiler_params=pltpu.CompilerParams(
            dimension_semantics=("arbitrary",)),
        cost_estimate=pl.CostEstimate(flops=flops, transcendentals=0,
                                      bytes_accessed=bytes_accessed),
    )(a_plus, x0, pool_mat,
      packed["w1"], packed["b1"], packed["w2"], packed["b2"],
      packed["wo"], packed["bo"])

    return out[:num_graphs, :packed["out_channels"]]


# ------------------------------- parameter handling -------------------------------

def init_params(key, in_channels, hidden_channels, num_layers, out_channels):
    """Logical (unpadded, f32) parameters matching the PyTorch module."""
    gnn, outs = [], []
    for i in range(num_layers):
        c_in = in_channels if i == 0 else hidden_channels
        key, k1, k2, k3, k4 = jax.random.split(key, 5)
        w1 = jax.random.normal(k1, (c_in, hidden_channels), jnp.float32) * 0.1
        b1 = jax.random.normal(k2, (1, hidden_channels), jnp.float32) * 0.1
        w2 = jax.random.normal(k3, (hidden_channels, hidden_channels), jnp.float32) * 0.1
        b2 = jax.random.normal(k4, (1, hidden_channels), jnp.float32) * 0.1
        gnn.append((w1, b1, w2, b2))
    for _ in range(num_layers):
        key, k1, k2 = jax.random.split(key, 3)
        wo = jax.random.normal(k1, (hidden_channels, out_channels), jnp.float32) * 0.1
        bo = jax.random.normal(k2, (1, out_channels), jnp.float32) * 0.1
        outs.append((wo, bo))
    return {"gnn": gnn, "out": outs}


def pack_params(params, in_channels, hidden_channels, out_channels):
    """Zero-pad to 128 lanes, stack over layers, fold BN-eval scale, cast weights to bf16."""
    p = _round_up(max(in_channels, hidden_channels), LANE)
    o_pad = _round_up(out_channels, LANE)

    w1s, b1s, w2s, b2s, wos, bos = [], [], [], [], [], []
    for (w1, b1, w2, b2) in params["gnn"]:
        w1s.append(jnp.zeros((p, p), jnp.float32)
                   .at[:w1.shape[0], :w1.shape[1]].set(w1 * BN_SCALE))
        b1s.append(jnp.zeros((1, p), jnp.float32)
                   .at[:, :b1.shape[1]].set(b1 * BN_SCALE))
        w2s.append(jnp.zeros((p, p), jnp.float32)
                   .at[:w2.shape[0], :w2.shape[1]].set(w2))
        b2s.append(jnp.zeros((1, p), jnp.float32).at[:, :b2.shape[1]].set(b2))
    for (wo, bo) in params["out"]:
        wos.append(jnp.zeros((p, o_pad), jnp.float32)
                   .at[:wo.shape[0], :wo.shape[1]].set(wo))
        bos.append(jnp.zeros((1, o_pad), jnp.float32).at[:, :bo.shape[1]].set(bo))

    return {
        "w1": jnp.stack(w1s).astype(jnp.bfloat16),   # [L, P, P]
        "b1": jnp.stack(b1s),                        # [L, 1, P]  f32
        "w2": jnp.stack(w2s).astype(jnp.bfloat16),   # [L, P, P]
        "b2": jnp.stack(b2s),                        # [L, 1, P]  f32
        "wo": jnp.stack(wos).astype(jnp.bfloat16),   # [L, P, Op]
        "bo": jnp.stack(bos),                        # [L, 1, Op] f32
        "out_channels": out_channels,
        "feat_pad": p,
        "out_pad": o_pad,
    }


if __name__ == "__main__":
    key = jax.random.PRNGKey(0)

    # small synthetic graph batch: 16 nodes, 2 graphs
    N, G = 16, 2
    in_channels, hidden_channels, num_layers, out_channels, dropout = 8, 32, 2, 8, 0.5

    key, kx = jax.random.split(key)
    x = jax.random.normal(kx, (N, in_channels), jnp.float32)

    # deterministic bidirectional ring edges
    s = jnp.arange(N, dtype=jnp.int32)
    d = (s + 1) % N
    edge_index = jnp.stack([jnp.concatenate([s, d]), jnp.concatenate([d, s])])  # [2, 2N]

    batch = jnp.concatenate([jnp.zeros(N // 2, jnp.int32), jnp.ones(N - N // 2, jnp.int32)])

    params = init_params(key, in_channels, hidden_channels, num_layers, out_channels)
    packed = pack_params(params, in_channels, hidden_channels, out_channels)

    score = gin_default_forward(packed, x, edge_index, batch, G)
    jax.block_until_ready(score)
    assert score.shape == (G, out_channels)
    print("KERNEL_OK")
</pallas_src>

<mosaic_0001>
module attributes {stable_mosaic.version = 11 : i64} {
  func.func @fused_gin_kernel(%arg0: i32, %arg1: memref<128x128xbf16, #tpu.memory_space<vmem>>, %arg2: memref<128x128xbf16, #tpu.memory_space<vmem>>, %arg3: memref<8x128xbf16, #tpu.memory_space<vmem>>, %arg4: memref<1x128x128xbf16, #tpu.memory_space<vmem>>, %arg5: memref<1x1x128xf32, #tpu.memory_space<vmem>>, %arg6: memref<1x128x128xbf16, #tpu.memory_space<vmem>>, %arg7: memref<1x1x128xf32, #tpu.memory_space<vmem>>, %arg8: memref<1x128x128xbf16, #tpu.memory_space<vmem>>, %arg9: memref<1x1x128xf32, #tpu.memory_space<vmem>>, %arg10: memref<8x128xf32, #tpu.memory_space<vmem>>, %arg11: memref<128x128xbf16, #tpu.memory_space<vmem>>) attributes {dimension_semantics = [#tpu.dimension_semantics<arbitrary>], iteration_bounds = array<i64: 2>, scalar_prefetch = 0 : i64, scratch_operands = 1 : i64, tpu.core_type = #tpu.core_type<tc>, window_params = [{pipeline_mode = #tpu.pipeline_mode<synchronous>, transform_indices = @transform_0, window_bounds = array<i64: 128, 128>}, {pipeline_mode = #tpu.pipeline_mode<synchronous>, transform_indices = @transform_1, window_bounds = array<i64: 128, 128>}, {pipeline_mode = #tpu.pipeline_mode<synchronous>, transform_indices = @transform_2, window_bounds = array<i64: 8, 128>}, {transform_indices = @transform_3, window_bounds = array<i64: 1, 128, 128>}, {transform_indices = @transform_4, window_bounds = array<i64: 1, 1, 128>}, {transform_indices = @transform_5, window_bounds = array<i64: 1, 128, 128>}, {transform_indices = @transform_6, window_bounds = array<i64: 1, 1, 128>}, {transform_indices = @transform_7, window_bounds = array<i64: 1, 128, 128>}, {transform_indices = @transform_8, window_bounds = array<i64: 1, 1, 128>}, {pipeline_mode = #tpu.pipeline_mode<synchronous>, transform_indices = @transform_9, window_bounds = array<i64: 8, 128>}]} {
    %c0_i32 = arith.constant 0 : i32
    %0 = arith.cmpi eq, %arg0, %c0_i32 : i32
    %1 = arith.extui %0 : i1 to i32
    %c0_i32_0 = arith.constant 0 : i32
    %2 = arith.cmpi ne, %1, %c0_i32_0 : i32
    scf.if %2 {
      %c0_35 = arith.constant 0 : index
      %c0_36 = arith.constant 0 : index
      %39 = vector.load %arg2[%c0_35, %c0_36] : memref<128x128xbf16, #tpu.memory_space<vmem>>, vector<128x128xbf16>
      %c0_37 = arith.constant 0 : index
      %c0_38 = arith.constant 0 : index
      %40 = vector.load %arg11[%c0_37, %c0_38] : memref<128x128xbf16, #tpu.memory_space<vmem>>, vector<128x128xbf16>
      tpu.vector_store %arg11[%c0_37, %c0_38], %39 {strides = array<i32>} : memref<128x128xbf16, #tpu.memory_space<vmem>>, vector<128x128xbf16>,
      %cst_39 = arith.constant 0.000000e+00 : f32
      %41 = vector.broadcast %cst_39 : f32 to vector<8x128xf32>
      %c0_40 = arith.constant 0 : index
      %c0_41 = arith.constant 0 : index
      %42 = vector.load %arg10[%c0_40, %c0_41] : memref<8x128xf32, #tpu.memory_space<vmem>>, vector<8x128xf32>
      tpu.vector_store %arg10[%c0_40, %c0_41], %41 {strides = array<i32>} : memref<8x128xf32, #tpu.memory_space<vmem>>, vector<8x128xf32>,
    } else {
    }
    %c0 = arith.constant 0 : index
    %c0_1 = arith.constant 0 : index
    %3 = vector.load %arg1[%c0, %c0_1] : memref<128x128xbf16, #tpu.memory_space<vmem>>, vector<128x128xbf16>
    %c0_2 = arith.constant 0 : index
    %c0_3 = arith.constant 0 : index
    %4 = vector.load %arg11[%c0_2, %c0_3] : memref<128x128xbf16, #tpu.memory_space<vmem>>, vector<128x128xbf16>
    %cst = arith.constant dense<0.000000e+00> : vector<128x128xf32>
    %5 = tpu.matmul %3, %4, %cst {dimension_numbers = #tpu.dot_dimension_numbers<[1], [0], [0], [1], [0, 0, 1, 1], [], []>} : vector<128x128xbf16>, vector<128x128xbf16>, vector<128x128xf32> -> vector<128x128xf32>
    %6 = arith.truncf %5 : vector<128x128xf32> to vector<128x128xbf16>
    %c0_4 = arith.constant 0 : index
    %c0_5 = arith.constant 0 : index
    %c0_6 = arith.constant 0 : index
    %7 = vector.load %arg4[%c0_4, %c0_5, %c0_6] : memref<1x128x128xbf16, #tpu.memory_space<vmem>>, vector<1x128x128xbf16>
    %8 = vector.shape_cast %7 : vector<1x128x128xbf16> to vector<128x128xbf16>
    %cst_7 = arith.constant dense<0.000000e+00> : vector<128x128xf32>
    %9 = tpu.matmul %6, %8, %cst_7 {dimension_numbers = #tpu.dot_dimension_numbers<[1], [0], [0], [1], [0, 0, 1, 1], [], []>} : vector<128x128xbf16>, vector<128x128xbf16>, vector<128x128xf32> -> vector<128x128xf32>
    %c0_8 = arith.constant 0 : index
    %c0_9 = arith.constant 0 : index
    %c0_10 = arith.constant 0 : index
    %10 = vector.load %arg5[%c0_8, %c0_9, %c0_10] : memref<1x1x128xf32, #tpu.memory_space<vmem>>, vector<1x1x128xf32>
    %11 = vector.shape_cast %10 : vector<1x1x128xf32> to vector<1x128xf32>
    %12 = vector.broadcast %11 : vector<1x128xf32> to vector<128x128xf32>
    %13 = arith.addf %9, %12 : vector<128x128xf32>
    %cst_11 = arith.constant 0.000000e+00 : f32
    %14 = vector.broadcast %cst_11 : f32 to vector<128x128xf32>
    %15 = arith.maximumf %13, %14 : vector<128x128xf32>
    %16 = arith.truncf %15 : vector<128x128xf32> to vector<128x128xbf16>
    %c0_12 = arith.constant 0 : index
    %c0_13 = arith.constant 0 : index
    %c0_14 = arith.constant 0 : index
    %17 = vector.load %arg6[%c0_12, %c0_13, %c0_14] : memref<1x128x128xbf16, #tpu.memory_space<vmem>>, vector<1x128x128xbf16>
    %18 = vector.shape_cast %17 : vector<1x128x128xbf16> to vector<128x128xbf16>
    %cst_15 = arith.constant dense<0.000000e+00> : vector<128x128xf32>
    %19 = tpu.matmul %16, %18, %cst_15 {dimension_numbers = #tpu.dot_dimension_numbers<[1], [0], [0], [1], [0, 0, 1, 1], [], []>} : vector<128x128xbf16>, vector<128x128xbf16>, vector<128x128xf32> -> vector<128x128xf32>
    %c0_16 = arith.constant 0 : index
    %c0_17 = arith.constant 0 : index
    %c0_18 = arith.constant 0 : index
    %20 = vector.load %arg7[%c0_16, %c0_17, %c0_18] : memref<1x1x128xf32, #tpu.memory_space<vmem>>, vector<1x1x128xf32>
    %21 = vector.shape_cast %20 : vector<1x1x128xf32> to vector<1x128xf32>
    %22 = vector.broadcast %21 : vector<1x128xf32> to vector<128x128xf32>
    %23 = arith.addf %19, %22 : vector<128x128xf32>
    %24 = arith.truncf %23 : vector<128x128xf32> to vector<128x128xbf16>
    %c0_19 = arith.constant 0 : index
    %c0_20 = arith.constant 0 : index
    %25 = vector.load %arg11[%c0_19, %c0_20] : memref<128x128xbf16, #tpu.memory_space<vmem>>, vector<128x128xbf16>
    tpu.vector_store %arg11[%c0_19, %c0_20], %24 {strides = array<i32>} : memref<128x128xbf16, #tpu.memory_space<vmem>>, vector<128x128xbf16>,
    %c0_21 = arith.constant 0 : index
    %c0_22 = arith.constant 0 : index
    %26 = vector.load %arg3[%c0_21, %c0_22] : memref<8x128xbf16, #tpu.memory_space<vmem>>, vector<8x128xbf16>
    %cst_23 = arith.constant dense<0.000000e+00> : vector<8x128xf32>
    %27 = tpu.matmul %26, %24, %cst_23 {dimension_numbers = #tpu.dot_dimension_numbers<[1], [0], [0], [1], [0, 0, 1, 1], [], []>} : vector<8x128xbf16>, vector<128x128xbf16>, vector<8x128xf32> -> vector<8x128xf32>
    %c0_24 = arith.constant 0 : index
    %c0_25 = arith.constant 0 : index
    %28 = vector.load %arg10[%c0_24, %c0_25] : memref<8x128xf32, #tpu.memory_space<vmem>>, vector<8x128xf32>
    %29 = arith.truncf %27 : vector<8x128xf32> to vector<8x128xbf16>
    %c0_26 = arith.constant 0 : index
    %c0_27 = arith.constant 0 : index
    %c0_28 = arith.constant 0 : index
    %30 = vector.load %arg8[%c0_26, %c0_27, %c0_28] : memref<1x128x128xbf16, #tpu.memory_space<vmem>>, vector<1x128x128xbf16>
    %31 = vector.shape_cast %30 : vector<1x128x128xbf16> to vector<128x128xbf16>
    %cst_29 = arith.constant dense<0.000000e+00> : vector<8x128xf32>
    %32 = tpu.matmul %29, %31, %cst_29 {dimension_numbers = #tpu.dot_dimension_numbers<[1], [0], [0], [1], [0, 0, 1, 1], [], []>} : vector<8x128xbf16>, vector<128x128xbf16>, vector<8x128xf32> -> vector<8x128xf32>
    %c0_30 = arith.constant 0 : index
    %c0_31 = arith.constant 0 : index
    %c0_32 = arith.constant 0 : index
    %33 = vector.load %arg9[%c0_30, %c0_31, %c0_32] : memref<1x1x128xf32, #tpu.memory_space<vmem>>, vector<1x1x128xf32>
    %34 = vector.shape_cast %33 : vector<1x1x128xf32> to vector<1x128xf32>
    %35 = vector.broadcast %34 : vector<1x128xf32> to vector<8x128xf32>
    %36 = arith.addf %32, %35 : vector<8x128xf32>
    %37 = arith.addf %28, %36 : vector<8x128xf32>
    %c0_33 = arith.constant 0 : index
    %c0_34 = arith.constant 0 : index
    %38 = vector.load %arg10[%c0_33, %c0_34] : memref<8x128xf32, #tpu.memory_space<vmem>>, vector<8x128xf32>
    tpu.vector_store %arg10[%c0_33, %c0_34], %37 {strides = array<i32>} : memref<8x128xf32, #tpu.memory_space<vmem>>, vector<8x128xf32>,
    return
  }
  func.func @transform_0(%arg0: i32) -> (i32, i32) {
    %c0_i32 = arith.constant 0 : i32
    %c0_i32_0 = arith.constant 0 : i32
    %c0_i32_1 = arith.constant 0 : i32
    return %c0_i32, %c0_i32_0 : i32, i32
  }
  func.func @transform_1(%arg0: i32) -> (i32, i32) {
    %c0_i32 = arith.constant 0 : i32
    %c0_i32_0 = arith.constant 0 : i32
    %c0_i32_1 = arith.constant 0 : i32
    return %c0_i32, %c0_i32_0 : i32, i32
  }
  func.func @transform_2(%arg0: i32) -> (i32, i32) {
    %c0_i32 = arith.constant 0 : i32
    %c0_i32_0 = arith.constant 0 : i32
    %c0_i32_1 = arith.constant 0 : i32
    return %c0_i32, %c0_i32_0 : i32, i32
  }
  func.func @transform_3(%arg0: i32) -> (i32, i32, i32) {
    %c0_i32 = arith.constant 0 : i32
    %c0_i32_0 = arith.constant 0 : i32
    %c0_i32_1 = arith.constant 0 : i32
    return %arg0, %c0_i32, %c0_i32_0 : i32, i32, i32
  }
  func.func @transform_4(%arg0: i32) -> (i32, i32, i32) {
    %c0_i32 = arith.constant 0 : i32
    %c0_i32_0 = arith.constant 0 : i32
    %c0_i32_1 = arith.constant 0 : i32
    return %arg0, %c0_i32, %c0_i32_0 : i32, i32, i32
  }
  func.func @transform_5(%arg0: i32) -> (i32, i32, i32) {
    %c0_i32 = arith.constant 0 : i32
    %c0_i32_0 = arith.constant 0 : i32
    %c0_i32_1 = arith.constant 0 : i32
    return %arg0, %c0_i32, %c0_i32_0 : i32, i32, i32
  }
  func.func @transform_6(%arg0: i32) -> (i32, i32, i32) {
    %c0_i32 = arith.constant 0 : i32
    %c0_i32_0 = arith.constant 0 : i32
    %c0_i32_1 = arith.constant 0 : i32
    return %arg0, %c0_i32, %c0_i32_0 : i32, i32, i32
  }
  func.func @transform_7(%arg0: i32) -> (i32, i32, i32) {
    %c0_i32 = arith.constant 0 : i32
    %c0_i32_0 = arith.constant 0 : i32
    %c0_i32_1 = arith.constant 0 : i32
    return %arg0, %c0_i32, %c0_i32_0 : i32, i32, i32
  }
  func.func @transform_8(%arg0: i32) -> (i32, i32, i32) {
    %c0_i32 = arith.constant 0 : i32
    %c0_i32_0 = arith.constant 0 : i32
    %c0_i32_1 = arith.constant 0 : i32
    return %arg0, %c0_i32, %c0_i32_0 : i32, i32, i32
  }
  func.func @transform_9(%arg0: i32) -> (i32, i32) {
    %c0_i32 = arith.constant 0 : i32
    %c0_i32_0 = arith.constant 0 : i32
    %c0_i32_1 = arith.constant 0 : i32
    return %c0_i32, %c0_i32_0 : i32, i32
  }
}

</mosaic_0001>

<bundles_post_ra>
// kernel: tpu_custom_call.1
= control target key start
LH: loop header
LB: loop body
LE: loop exit
PB: predicated region body
PF: predicated region fallthrough
CT: control target
= control target key end

     0   :  { %s2461_s0 = inlined_call_operand.hbm [shape: bf16[128,128], index: 0, kind: input, shape index: {}]   ;;  %s2462_s1 = inlined_call_operand.hbm [shape: bf16[128,128], index: 1, kind: input, shape index: {}]   ;;  %s2463_s2 = inlined_call_operand.vmem [shape: bf16[8,128], index: 2, kind: input, shape index: {}]   ;;  %s2464_s3 = inlined_call_operand.hbm [shape: bf16[2,128,128], index: 3, kind: input, shape index: {}]   ;;  %s2465_s4 = inlined_call_operand.vmem [shape: f32[2,1,128], index: 4, kind: input, shape index: {}]   ;;  %s2466_s5 = inlined_call_operand.hbm [shape: bf16[2,128,128], index: 5, kind: input, shape index: {}]   ;;  %s2467_s6 = inlined_call_operand.vmem [shape: f32[2,1,128], index: 6, kind: input, shape index: {}]   ;;  %s2468_s7 = inlined_call_operand.hbm [shape: bf16[2,128,128], index: 7, kind: input, shape index: {}]   ;;  %s2469_s8 = inlined_call_operand.vmem [shape: f32[2,1,128], index: 8, kind: input, shape index: {}]   ;;  %s2470_s9 = inlined_call_operand.hbm [shape: f32[8,128], index: 9, kind: output, shape index: {}]  }
   0x1   :  { %2489 = sst [smem:[#allocation19_spill]] %s2461_s0 }
   0x2   :  { %2490 = sst [smem:[#allocation20_spill]] %s2463_s2 }
   0x3   :  { %2491 = sst [smem:[#allocation21_spill]] %s2464_s3 }
   0x4   :  { %2492 = sst [smem:[#allocation22_spill]] %s2470_s9 }
   0x5   :  { %14 = vsyncpa [#allocation4], 0 }
   0x6   :  { %15 = vsyncpa [#allocation7], 0 }
   0x7   :  { %16 = vsyncpa [#allocation5], 0  ;;  %s2088_s30 = smov 0   ;;  %s2090_s10 = smov 0  }
   0x8   :  { %s2092_s11 = smov 0   ;;  %s2094_s12 = smov 0  }
   0x9 LB: > { %2493 = sst [smem:[#allocation16_spill]] %s2021_s11  ;;  %s2107_s13 = sadd.s32 4294967295, %s2025_s12   ;;  %s2025_s12 = sphi %s2094_s12, %s2522_s12   ;;  %s2021_s11 = sphi %s2092_s11, %s2524_s11   ;;  %s2017_s10 = sphi %s2090_s10, %s2526_s10   ;;  %s2013_s30 = sphi %s2088_s30, %s2525_s30  }
   0xa   : > { %s2110_s14 = sadd.s32 1, %s2025_s12   ;;  %s92_s16 = sadd.s32 1, %s2021_s11 }
   0xb   : > { %2494 = sst [smem:[#allocation17_spill]] %s2110_s14  ;;  %s89_s15 = ssub.s32 %s2025_s12, %s2110_s14 }
   0xc   : > { %p90_p0 = scmp.eq.s32.totalorder %s89_s15, 0  ;;  %p99_p1 = scmp.ne.s32.totalorder %s2021_s11, %s2017_s10 }
   0xd   : > { %p100_p2 = scmp.eq.s32.totalorder %s2025_s12, 0  ;;  %p105_p3 = scmp.ne.s32.totalorder %s2017_s10, %s2013_s30 }
   0xe   : > { %s2120_s17 = scalar_select %p90_p0, %s2021_s11, %s92_s16  }
   0xf   : > { %p2122_p4 = por %p100_p2, %p99_p1  ;;  %p2471_p5 = scmp.eq.s32.totalorder %s2107_s13, 0 }
  0x10   : > { %2495 = sst [smem:[#allocation18_spill]] %s2120_s17  ;;  %p1413_p6 = scmp.ge.s32.totalorder %s2025_s12, 1 }
  0x11   : > { %p267_p7 = scmp.lt.s32.totalorder %s2025_s12, 3  ;;  %p2131_p8 = por %p2471_p5, %p105_p3 }
  0x12   : > { %s2027_s21 = smov [#allocation3]   ;;  %p1722_p13 = scmp.lt.s32.totalorder %s2025_s12, 2 }
  0x13   : > { %s2497_s19 = scalar_select %p2131_p8, 1, 0 }
  0x14   : > { %p2136_p10 = pnand %p1413_p6, %p267_p7  ;;  %s279_s22 = sshll.u32 %s2027_s21, 4  ;;  %s280_s22 = int_to_ptr.vmem [resolvable:$true] %s279_s22 }
  0x15   : > { %s311_s25 = sand.u32 1, %s2021_s11   ;;  %p2153_p0 = pnand %p1722_p13, %p2122_p4 }
  0x16   : > { %s2498_s20 = scalar_select %p2136_p10, 1, 0 }
  0x17   : > { %p1703_p11 = pneg %p2136_p10  ;;  %s2501_s0 = sld [smem:[#allocation19_spill]] }
  0x18   : > { %s2500_s26 = scalar_select %p2153_p0, 1, 0 }
  0x19   : > { %p2144_p12 = pnand %p1703_p11, %p2471_p5 }
  0x1b   : > { %s2499_s23 = scalar_select %p2144_p12, 1, 0 }
  0x1c   : > { %p2480_p2 = pneg %p2144_p12 }
  0x1d   : > { %s1807_s29 = scalar_lea.hbm %s2501_s0, 1024 }
  0x1e   : > { %p1808_p1 = scmp.ne.s32.totalorder %s2501_s0, %s1807_s29  ;;  %p1814_p4 = scmp.lt.u32.totalorder %s1807_s29, %s2501_s0 }
  0x20   : > { %p1810_p3 = pnand %p2480_p2, %p1808_p1 }
  0x22   : > { %p1811_p6 = pneg %p1810_p3 }
  0x24   : > { %p1816_p7 = pnand %p1814_p4, %p1811_p6 }
  0x26   : > { %1819 = shalt.err (!%p1816_p7)
}
  0x27   : > { %s1820_s21 = scalar_lea.vmem %s280_s22, 1024  ;;  %p1828_p5 = scmp.lt.s32.totalorder %s280_s22, %s280_s22 }
  0x28   : > { %p1821_p11 = scmp.ne.s32.totalorder %s280_s22, %s1820_s21  ;;  %p1829_p8 = scmp.lt.s32.totalorder %s1820_s21, %s1820_s21 }
  0x2a   : > { %p1823_p13 = pnand %p1821_p11, %p2480_p2  ;;  %p1830_p10 = por %p1829_p8, %p1828_p5 }
  0x2c   : > { %p1824_p9 = pneg %p1823_p13 }
  0x2e   : > { %p1831_p0 = pnand %p1830_p10, %p1824_p9 }
  0x30   : > { %1834 = shalt.err (!%p1831_p0)
}
  0x31   : > { %s2476_s27 = smov 64   ;;  %s2478_s28 = smov 4  }
  0x32   : > { %1706 = dma.hbm_to_vmem [thread:$0]  (!%p2144_p12), %s2501_s0, 1024, %s280_s22, [#allocation4], %s2476_s27, %s2476_s27, %s2478_s28  }
  0x33   : > { %s2182_s15 = sshll.u32 %s311_s25, 6  ;;  %s2185_s16 = sshll.u32 %s2025_s12, 10 }
  0x34   : > { %s2502_s3 = sld [smem:[#allocation21_spill]]  ;;  %s313_s17 = scalar_lea.vmem [#allocation8], %s2182_s15 }
  0x35   : > { %s320_s11 = sshll.u32 %s313_s17, 4  ;;  %s2200_s29 = scalar_lea.hbm %s2466_s5, %s2185_s16  ;;  %s2194_s11 = int_to_ptr.vmem [resolvable:$true] %s320_s11 }
  0x36   : > { %s2503_s30 = sand.u32 1, %s2025_s12   ;;  %p2504_p8 = scmp.ne.s32.totalorder %s2500_s26, 0 }
  0x37   : > { %s2204_s27 = scalar_lea.sflag [#allocation4], %s2503_s30 }
  0x38   : > { %p2210_p9 = pneg %p2504_p8 }
  0x3a   : > { %s2191_s24 = scalar_lea.hbm %s2502_s3, %s2185_s16  ;;  %s1840_s22 = scalar_lea.hbm %s2502_s3, 2048 }
  0x3b   : > { %s1835_s18 = scalar_lea.hbm %s2191_s24, 1024  ;;  %p1841_p1 = scmp.lt.u32.totalorder %s2191_s24, %s2502_s3 }
  0x3c   : > { %p1836_p5 = scmp.ne.s32.totalorder %s2191_s24, %s1835_s18  ;;  %p1842_p3 = scmp.lt.u32.totalorder %s1840_s22, %s1835_s18 }
  0x3d   : > { %s2505_s21 = scalar_select %p2210_p9, 1, 0 }
  0x3e   : > { %p1838_p10 = pnand %p2210_p9, %p1836_p5  ;;  %p1843_p6 = por %p1842_p3, %p1841_p1 }
  0x3f   : > { %p1844_p4 = scmp.lt.u32.totalorder %s1835_s18, %s2191_s24 }
  0x40   : > { %p1839_p0 = pneg %p1838_p10 }
  0x41   : > { %p1845_p7 = por %p1844_p4, %p1843_p6 }
  0x43   : > { %p1846_p11 = pnand %p1845_p7, %p1839_p0 }
  0x45   : > { %1849 = shalt.err (!%p1846_p11)
}
  0x46   : > { %s1850_s12 = scalar_lea.vmem %s2194_s11, 1024  ;;  %s2030_s28 = smov [#allocation8]  }
  0x47   : > { %p1851_p13 = scmp.ne.s32.totalorder %s2194_s11, %s1850_s12  ;;  %s1855_s30 = sshll.u32 %s2030_s28, 4  ;;  %s1856_s30 = int_to_ptr.vmem [resolvable:$false] %s1855_s30 }
  0x48   : > { %s1857_s0 = scalar_lea.vmem %s1856_s30, 2048  ;;  %p1858_p2 = scmp.lt.s32.totalorder %s2194_s11, %s1856_s30 }
  0x49   : > { %p1853_p5 = pnand %p1851_p13, %p2210_p9  ;;  %p1859_p12 = scmp.lt.s32.totalorder %s1857_s0, %s1850_s12 }
  0x4b   : > { %p1854_p10 = pneg %p1853_p5  ;;  %p1860_p1 = por %p1859_p12, %p1858_p2 }
  0x4d   : > { %p1861_p3 = pnand %p1860_p1, %p1854_p10 }
  0x4f   : > { %1864 = shalt.err (!%p1861_p3)
}
  0x50   : > { %s2506_s18 = smov 4   ;;  %s2507_s17 = smov 64  }
  0x51   : > { %1713 = dma.hbm_to_vmem [thread:$0]  (!%p2504_p8), %s2191_s24, 1024, %s2194_s11, %s2204_s27, %s2507_s17, %s2507_s17, %s2506_s18  }
  0x52   : > { %s340_s22 = scalar_lea.vmem [#allocation9], %s2182_s15  ;;  %s2031_s12 = smov [#allocation6]  }
  0x53   : > { %s347_s25 = sshll.u32 %s340_s22, 4  ;;  %s2240_s28 = sshll.u32 %s2031_s12, 4  ;;  %s2238_s25 = int_to_ptr.vmem [resolvable:$true] %s347_s25  ;;  %s293_s28 = int_to_ptr.vmem [resolvable:$true] %s2240_s28 }
  0x54   : > { %s1865_s30 = scalar_lea.hbm %s2200_s29, 1024  ;;  %s1870_s14 = scalar_lea.hbm %s2466_s5, 2048 }
  0x55   : > { %p1866_p12 = scmp.ne.s32.totalorder %s2200_s29, %s1865_s30  ;;  %p1871_p6 = scmp.lt.u32.totalorder %s2200_s29, %s2466_s5 }
  0x56   : > { %p1872_p4 = scmp.lt.u32.totalorder %s1870_s14, %s1865_s30  ;;  %p1874_p11 = scmp.lt.u32.totalorder %s1865_s30, %s2200_s29 }
  0x57   : > { %p1868_p2 = pnand %p1866_p12, %p2210_p9 }
  0x58   : > { %p1873_p7 = por %p1872_p4, %p1871_p6 }
  0x59   : > { %p1869_p0 = pneg %p1868_p2 }
  0x5a   : > { %p1875_p13 = por %p1874_p11, %p1873_p7 }
  0x5c   : > { %p1876_p5 = pnand %p1875_p13, %p1869_p0 }
  0x5e   : > { %1879 = shalt.err (!%p1876_p5)
}
  0x5f   : > { %s1880_s11 = scalar_lea.vmem %s2238_s25, 1024  ;;  %s2032_s3 = smov [#allocation9]  }
  0x60   : > { %p1881_p10 = scmp.ne.s32.totalorder %s2238_s25, %s1880_s11  ;;  %s1885_s24 = sshll.u32 %s2032_s3, 4  ;;  %s1886_s24 = int_to_ptr.vmem [resolvable:$false] %s1885_s24 }
  0x61   : > { %s1887_s2 = scalar_lea.vmem %s1886_s24, 2048  ;;  %p1888_p12 = scmp.lt.s32.totalorder %s2238_s25, %s1886_s24 }
  0x62   : > { %p1883_p1 = pnand %p1881_p10, %p2210_p9  ;;  %p1889_p2 = scmp.lt.s32.totalorder %s1887_s2, %s1880_s11 }
  0x64   : > { %p1884_p3 = pneg %p1883_p1  ;;  %p1890_p6 = por %p1889_p2, %p1888_p12 }
  0x66   : > { %p1891_p4 = pnand %p1890_p6, %p1884_p3 }
  0x68   : > { %1894 = shalt.err (!%p1891_p4)
}
  0x69   : > { %1716 = dma.hbm_to_vmem [thread:$0]  (!%p2504_p8), %s2200_s29, 1024, %s2238_s25, %s2204_s27, %s2507_s17, %s2507_s17, %s2506_s18  }
  0x6a   : > { %s1895_s22 = scalar_lea.hbm %s2462_s1, 1024  ;;  %p2508_p7 = scmp.ne.s32.totalorder %s2499_s23, 0 }
  0x6b   : > { %p1896_p0 = scmp.ne.s32.totalorder %s2462_s1, %s1895_s22  ;;  %p1902_p10 = scmp.lt.u32.totalorder %s1895_s22, %s2462_s1 }
  0x6c   : > { %p2509_p11 = pneg %p2508_p7 }
  0x6e   : > { %p1898_p13 = pnand %p1896_p0, %p2509_p11 }
  0x70   : > { %p1899_p5 = pneg %p1898_p13 }
  0x72   : > { %p1904_p1 = pnand %p1902_p10, %p1899_p5 }
  0x74   : > { %1907 = shalt.err (!%p1904_p1)
}
  0x75   : > { %s1908_s29 = scalar_lea.vmem %s293_s28, 1024  ;;  %p2510_p12 = pmov %p2509_p11 }
  0x76   : > { %p1909_p3 = scmp.ne.s32.totalorder %s293_s28, %s1908_s29  ;;  %p1916_p4 = scmp.lt.s32.totalorder %s293_s28, %s293_s28 }
  0x77   : > { %p1917_p8 = scmp.lt.s32.totalorder %s1908_s29, %s1908_s29 }
  0x78   : > { %p1911_p2 = pnand %p1909_p3, %p2510_p12 }
  0x79   : > { %p1918_p9 = por %p1917_p8, %p1916_p4 }
  0x7a   : > { %p1912_p6 = pneg %p1911_p2 }
  0x7c   : > { %p1919_p0 = pnand %p1918_p9, %p1912_p6 }
  0x7e   : > { %1922 = shalt.err (!%p1919_p0)
}
  0x7f   : > { %1709 = dma.hbm_to_vmem [thread:$0]  (!%p2508_p7), %s2462_s1, 1024, %s293_s28, [#allocation7], %s2507_s17, %s2507_s17, %s2506_s18  }
  0x80   : > { %s2295_s9 = scalar_lea.hbm %s2468_s7, %s2185_s16  ;;  %s367_s23 = scalar_lea.vmem [#allocation10], %s2182_s15 }
  0x81   : > { %s374_s14 = sshll.u32 %s367_s23, 4  ;;  %s1923_s22 = scalar_lea.hbm %s2295_s9, 1024  ;;  %s2298_s14 = int_to_ptr.vmem [resolvable:$true] %s374_s14 }
  0x82   : > { %p1924_p8 = scmp.ne.s32.totalorder %s2295_s9, %s1923_s22  ;;  %p2511_p9 = scmp.ne.s32.totalorder %s2505_s21, 0 }
  0x83   : > { %s1928_s30 = scalar_lea.hbm %s2468_s7, 2048  ;;  %p1929_p7 = scmp.lt.u32.totalorder %s2295_s9, %s2468_s7 }
  0x84   : > { %p1926_p11 = pnand %p1924_p8, %p2511_p9  ;;  %p1930_p5 = scmp.lt.u32.totalorder %s1928_s30, %s1923_s22 }
  0x85   : > { %p1932_p1 = scmp.lt.u32.totalorder %s1923_s22, %s2295_s9 }
  0x86   : > { %p1927_p13 = pneg %p1926_p11  ;;  %p1931_p10 = por %p1930_p5, %p1929_p7 }
  0x88   : > { %p1933_p3 = por %p1932_p1, %p1931_p10 }
  0x8a   : > { %p1934_p12 = pnand %p1933_p3, %p1927_p13 }
  0x8c   : > { %1937 = shalt.err (!%p1934_p12)
}
  0x8d   : > { %s1938_s15 = scalar_lea.vmem %s2298_s14, 1024  ;;  %s2033_s11 = smov [#allocation10]  }
  0x8e   : > { %p1939_p2 = scmp.ne.s32.totalorder %s2298_s14, %s1938_s15  ;;  %s1943_s29 = sshll.u32 %s2033_s11, 4  ;;  %s1944_s29 = int_to_ptr.vmem [resolvable:$false] %s1943_s29 }
  0x8f   : > { %s1945_s25 = scalar_lea.vmem %s1944_s29, 2048  ;;  %p1946_p0 = scmp.lt.s32.totalorder %s2298_s14, %s1944_s29 }
  0x90   : > { %p1941_p6 = pnand %p1939_p2, %p2511_p9  ;;  %p1947_p8 = scmp.lt.s32.totalorder %s1945_s25, %s1938_s15 }
  0x92   : > { %p1942_p4 = pneg %p1941_p6  ;;  %p1948_p11 = por %p1947_p8, %p1946_p0 }
  0x94   : > { %p1949_p7 = pnand %p1948_p11, %p1942_p4 }
  0x96   : > { %1952 = shalt.err (!%p1949_p7)
}
  0x97   : > { %p2512_p13 = scmp.ne.s32.totalorder %s2500_s26, 0  ;;  %p2513_p9 = scmp.ne.s32.totalorder %s2498_s20, 0 }
  0x98   : > { %p2514_p5 = scmp.eq.s32.totalorder (!%p2513_p9), %s2107_s13, 0 }
  0x99   : > { %1719 = dma.hbm_to_vmem [thread:$0]  (!%p2512_p13), %s2295_s9, 1024, %s2298_s14, %s2204_s27, %s2507_s17, %s2507_s17, %s2506_s18  }
  0x9a   : > { %392 = sbr.rel (%p2513_p9) target bundleno = 1355 (0x54b), region = 56 }
  0xa1   : > { %1996 = dma.done.wait (%p2514_p5), [#allocation4], 1024   ;;  %p2515_p10 = pmov %p2514_p5 }
  0xa2   : > { %p2516_p1 = pmov %p2514_p5 }
  0xa3   : > { %1998 = vsyncadd (%p2515_p10), [#allocation4], 4294966272 }
  0xa4   : > { %2000 = dma.done.wait (%p2516_p1), [#allocation7], 1024   ;;  %p2517_p3 = pmov %p2516_p1 }
  0xa5   : > { %s402_s26 = sand.u32 1, %s2107_s13   ;;  %s404_s27 = sand.u32 1, %s2017_s10  }
  0xa6   : > { %2002 = vsyncadd (%p2517_p3), [#allocation7], 4294966272  ;;  %s1429_s21 = sshll.u32 %s404_s27, 6  ;;  %s403_s20 = scalar_lea.sflag [#allocation4], %s402_s26 }
  0xa7   : > { %s2337_s18 = scalar_lea.vmem [#allocation8], %s1429_s21  ;;  %p2518_p12 = scmp.ne.s32.totalorder %s2497_s19, 0 }
  0xa9   : > { %2004 = dma.done.wait (%p2518_p12), %s403_s20, 3072  }
  0xaa   : > { %2006 = vsyncadd (%p2518_p12), %s403_s20, 4294964224  ;;  %p473_p2 = scmp.lt.s32.totalorder %s2107_s13, 1  ;;  %s2359_s28 = scalar_lea.vmem [#allocation9], %s1429_s21 }
  0xab   : > { %s2361_s30 = scalar_lea.vmem [#allocation10], %s1429_s21  ;;  %p2519_p6 = scmp.ne.s32.totalorder %s2107_s13, 0 }
  0xac   : > { %s2345_s17 = scalar_select %p473_p2, %s2107_s13, 1 }
  0xad   : > { %486 = sbr.rel (%p2519_p6) target bundleno = 180 (0xb4), region = 80  ;;  %v1767_v0 = vld [vmem:[#allocation6] sm:$0xff] (!%p2519_p6)   ;;  %v1768_v1 = vld [vmem:[#allocation6 + $0x8] sm:$0xff] (!%p2519_p6)   ;;  %v2034_v2 = vmov (!%p2519_p6), 0.0   ;;  %v1769_v3 = vld [vmem:[#allocation6 + $0x10] sm:$0xff] (!%p2519_p6)  }
  0xae   : > { %s475_s2 = scalar_lea.vmem %s2465_s4, %s2345_s17  ;;  %s478_s14 = scalar_lea.vmem %s2467_s6, %s2345_s17  ;;  %559 = vst [vmem:[#allocation11] sm:$0xff] (!%p2519_p6), %v2034_v2  ;;  %551 = vst [vmem:[#allocation2] sm:$0xff] (!%p2519_p6), %v1767_v0  ;;  %v1770_v4 = vld [vmem:[#allocation6 + $0x18] sm:$0xff] (!%p2519_p6)   ;;  %v1771_v5 = vld [vmem:[#allocation6 + $0x20] sm:$0xff] (!%p2519_p6)  }
  0xaf   : > { %s481_s19 = scalar_lea.vmem %s2469_s8, %s2345_s17  ;;  %552 = vst [vmem:[#allocation2 + $0x8] sm:$0xff] (!%p2519_p6), %v1768_v1  ;;  %553 = vst [vmem:[#allocation2 + $0x10] sm:$0xff] (!%p2519_p6), %v1769_v3  ;;  %v1772_v6 = vld [vmem:[#allocation6 + $0x28] sm:$0xff] (!%p2519_p6)   ;;  %v1773_v7 = vld [vmem:[#allocation6 + $0x30] sm:$0xff] (!%p2519_p6)  }
  0xb0   : > { %554 = vst [vmem:[#allocation2 + $0x18] sm:$0xff] (!%p2519_p6), %v1770_v4  ;;  %555 = vst [vmem:[#allocation2 + $0x20] sm:$0xff] (!%p2519_p6), %v1771_v5  ;;  %v1774_v8 = vld [vmem:[#allocation6 + $0x38] sm:$0xff] (!%p2519_p6)  }
  0xb1   : > { %556 = vst [vmem:[#allocation2 + $0x28] sm:$0xff] (!%p2519_p6), %v1772_v6  ;;  %557 = vst [vmem:[#allocation2 + $0x30] sm:$0xff] (!%p2519_p6), %v1773_v7 }
  0xb2   : > { %558 = vst [vmem:[#allocation2 + $0x38] sm:$0xff] (!%p2519_p6), %v1774_v8 }
  0xb4 PF: > { %v1775_v11 = vld [vmem:[#allocation3] sm:$0xff]   ;;  %v1784_v16 = vld [vmem:[%s2337_s18 + $0x8] sm:$0xff]   ;;  %v1785_v17 = vld [vmem:[%s2337_s18 + $0x10] sm:$0xff]   ;;  %vm2036_vm0 = vmmov 0   ;;  %s2520_s26 = sld [smem:[#allocation20_spill]]  ;;  %s2037_s20 = smov [#allocation11]  }
  0xb5   : > { %v576_v9 = vld [vmem:[#allocation2] sm:$0xff]  ;;  %1565 = vmatprep.mubr.bf16.mxu0 %v1775_v11  ;;  %v1786_v19 = vld [vmem:[%s2337_s18 + $0x18] sm:$0xff]   ;;  %v1788_v23 = vld [vmem:[%s2337_s18 + $0x28] sm:$0xff]   ;;  %p1725_p4 = scmp.eq.s32.totalorder %s2107_s13, 1 }
  0xb6   : > { %v577_v10 = vld [vmem:[#allocation2 + $0x8] sm:$0xff]  ;;  %1549 = vmatprep.subr.bf16.mxu0 %v576_v9  ;;  %v578_v12 = vld [vmem:[#allocation2 + $0x10] sm:$0xff]  ;;  %v1783_v15 = vld [vmem:[%s2337_s18] sm:$0xff]  }
  0xb7   : > { %1550 = vmatpush3.bf16.msra.mxu0 %v576_v9  ;;  %v579_v13 = vld [vmem:[#allocation2 + $0x18] sm:$0xff]  ;;  %v580_v14 = vld [vmem:[#allocation2 + $0x20] sm:$0xff]  ;;  %1581 = vmatprep.subr.bf16.mxu1 %v1783_v15  ;;  %v1776_v24 = vld [vmem:[#allocation3 + $0x8] sm:$0xff]  }
  0xb8   : > { %1551 = vmatprep.subr.bf16.mxu0 %v577_v10  ;;  %1582 = vmatpush3.bf16.msra.mxu1 %v1783_v15  ;;  %v581_v18 = vld [vmem:[#allocation2 + $0x28] sm:$0xff]  ;;  %v582_v20 = vld [vmem:[#allocation2 + $0x30] sm:$0xff]  ;;  %v1787_v21 = vld [vmem:[%s2337_s18 + $0x20] sm:$0xff]  }
  0xb9   : > { %1583 = vmatprep.subr.bf16.mxu1 %v1784_v16  ;;  %v583_v22 = vld [vmem:[#allocation2 + $0x38] sm:$0xff]  ;;  %v1777_v25 = vld [vmem:[#allocation3 + $0x10] sm:$0xff]   ;;  %v1779_v28 = vld [vmem:[#allocation3 + $0x20] sm:$0xff]  }
  0xba   : > { %v1789_v26 = vld [vmem:[%s2337_s18 + $0x30] sm:$0xff]   ;;  %v1778_v27 = vld [vmem:[#allocation3 + $0x18] sm:$0xff]   ;;  %v1780_v29 = vld [vmem:[#allocation3 + $0x28] sm:$0xff]  }
  0xbb   : > { %1552 = vmatpush3.bf16.msra.mxu0 %v577_v10  ;;  %v1781_v30 = vld [vmem:[#allocation3 + $0x30] sm:$0xff]   ;;  %v1782_v31 = vld [vmem:[#allocation3 + $0x38] sm:$0xff]   ;;  %v1791_v33 = vld [vmem:[%s2359_s28] sm:$0xff]  }
  0xbc   : > { %1553 = vmatprep.subr.bf16.mxu0 %v578_v12  ;;  %1584 = vmatpush3.bf16.msra.mxu1 %v1784_v16  ;;  %v1790_v32 = vld [vmem:[%s2337_s18 + $0x38] sm:$0xff]   ;;  %v1792_v34 = vld [vmem:[%s2359_s28 + $0x8] sm:$0xff]   ;;  %v1793_v35 = vld [vmem:[%s2359_s28 + $0x10] sm:$0xff]   ;;  %s1276_s18 = sshll.u32 %s2037_s20, 4  ;;  %s1277_s18 = int_to_ptr.vmem [resolvable:$true] %s1276_s18 }
  0xbd   : > { %1585 = vmatprep.subr.bf16.mxu1 %v1785_v17  ;;  %v1794_v36 = vld [vmem:[%s2359_s28 + $0x18] sm:$0xff]   ;;  %v1795_v37 = vld [vmem:[%s2359_s28 + $0x20] sm:$0xff]   ;;  %v1796_v38 = vld [vmem:[%s2359_s28 + $0x28] sm:$0xff]   ;;  %s1953_s3 = scalar_lea.vmem %s1277_s18, 128  ;;  %p1960_p7 = scmp.lt.s32.totalorder %s1277_s18, %s1277_s18 }
  0xbe   : > { %v1797_v63 = vld [vmem:[%s2359_s28 + $0x30] sm:$0xff]   ;;  %v1798_v0 = vld [vmem:[%s2359_s28 + $0x38] sm:$0xff]   ;;  %v1449_v1 = vld [vmem:[%s475_s2] ss:$0 sm:$0xff]  ;;  %p1954_p0 = scmp.ne.s32.totalorder %s1277_s18, %s1953_s3  ;;  %p1961_p13 = scmp.lt.s32.totalorder %s1953_s3, %s1953_s3 }
  0xbf   : > { %1554 = vmatpush3.bf16.msra.mxu0 %v578_v12 }
  0xc0   : > { %1555 = vmatprep.subr.bf16.mxu0 %v579_v13  ;;  %1586 = vmatpush3.bf16.msra.mxu1 %v1785_v17  ;;  %p1955_p8 = pnand %p1954_p0, %p1725_p4  ;;  %p1962_p9 = por %p1961_p13, %p1960_p7 }
  0xc1   : > { %1587 = vmatprep.subr.bf16.mxu1 %v1786_v19 }
  0xc2   : > { %p1956_p11 = pneg %p1955_p8 }
  0xc3   : > { %1556 = vmatpush3.bf16.msra.mxu0 %v579_v13 }
  0xc4   : > { %1557 = vmatprep.subr.bf16.mxu0 %v580_v14  ;;  %1588 = vmatpush3.bf16.msra.mxu1 %v1786_v19  ;;  %p1963_p5 = pnand %p1962_p9, %p1956_p11 }
  0xc5   : > { %1589 = vmatprep.subr.bf16.mxu1 %v1787_v21 }
  0xc7   : > { %1558 = vmatpush3.bf16.msra.mxu0 %v580_v14 }
  0xc8   : > { %1559 = vmatprep.subr.bf16.mxu0 %v581_v18  ;;  %1590 = vmatpush3.bf16.msra.mxu1 %v1787_v21 }
  0xc9   : > { %1591 = vmatprep.subr.bf16.mxu1 %v1788_v23 }
  0xcb   : > { %1560 = vmatpush3.bf16.msra.mxu0 %v581_v18 }
  0xcc   : > { %1561 = vmatprep.subr.bf16.mxu0 %v582_v20  ;;  %1592 = vmatpush3.bf16.msra.mxu1 %v1788_v23 }
  0xcd   : > { %1593 = vmatprep.subr.bf16.mxu1 %v1789_v26 }
  0xcf   : > { %1562 = vmatpush3.bf16.msra.mxu0 %v582_v20 }
  0xd0   : > { %1563 = vmatprep.subr.bf16.mxu0 %v583_v22  ;;  %1594 = vmatpush3.bf16.msra.mxu1 %v1789_v26 }
  0xd1   : > { %1595 = vmatprep.subr.bf16.mxu1 %v1790_v32 }
  0xd3   : > { %1564 = vmatpush3.bf16.msra.mxu0 %v583_v22 }
  0xd4   : > { %1596 = vmatpush3.bf16.msra.mxu1 %v1790_v32  ;;  %1613 = vmatprep.subr.bf16.mxu0 %v1791_v33 }
  0xd6   : > { %1566 = vmatmul.mubr.bf16.vlgmr.msra.gmra.mrb[0].mxu0 %v1776_v24 }
  0xd7   : > { %1569 = vmatprep.mubr.bf16.mxu0 %v1777_v25  ;;  %1614 = vmatpush3.bf16.msra.mxu0 %v1791_v33 }
  0xd8   : > { %1615 = vmatprep.subr.bf16.mxu0 %v1792_v34 }
  0xdb   : > { %1616 = vmatpush3.bf16.msra.mxu0 %v1792_v34 }
  0xdc   : > { %1617 = vmatprep.subr.bf16.mxu0 %v1793_v35 }
  0xde   : > { %1570 = vmatmul.mubr.bf16.gmra.mrb[4].mxu0 %v1778_v27 }
  0xdf   : > { %1573 = vmatprep.mubr.bf16.mxu0 %v1779_v28  ;;  %1618 = vmatpush3.bf16.msra.mxu0 %v1793_v35 }
  0xe0   : > { %1619 = vmatprep.subr.bf16.mxu0 %v1794_v36 }
  0xe3   : > { %1620 = vmatpush3.bf16.msra.mxu0 %v1794_v36 }
  0xe4   : > { %1621 = vmatprep.subr.bf16.mxu0 %v1795_v37 }
  0xe6   : > { %1574 = vmatmul.mubr.bf16.gmra.mrb[8].mxu0 %v1780_v29 }
  0xe7   : > { %1577 = vmatprep.mubr.bf16.mxu0 %v1781_v30  ;;  %1622 = vmatpush3.bf16.msra.mxu0 %v1795_v37 }
  0xe8   : > { %1623 = vmatprep.subr.bf16.mxu0 %v1796_v38 }
  0xeb   : > { %1624 = vmatpush3.bf16.msra.mxu0 %v1796_v38 }
  0xec   : > { %1625 = vmatprep.subr.bf16.mxu0 %v1797_v63 }
  0xee   : > { %1578 = vmatmul.mubr.bf16.gmra.mrb[12].mxu0 %v1782_v31 }
  0xef   : > { %1626 = vmatpush3.bf16.msra.mxu0 %v1797_v63  ;;  %v1803_v63 = vld [vmem:[%s2361_s30 + $0x20] sm:$0xff]  }
  0xf0   : > { %1627 = vmatprep.subr.bf16.mxu0 %v1798_v0 }
  0xf3   : > { %1628 = vmatpush3.bf16.msra.mxu0 %v1798_v0  ;;  %v1804_v0 = vld [vmem:[%s2361_s30 + $0x28] sm:$0xff]  }
 0x1a9   : > { %v1567_v39 = vpop.f32.mrb[0].mxu0 }
 0x1aa   : > { %v666_v40 = vpop.f32.mrb[1].mxu0 }
 0x1ab   : > { %v1568_v41 = vpop.f32.mrb[2].mxu0 }
 0x1ac   : > { %v730_v42 = vpack.c.bf16 %v1568_v41, %v1567_v39  ;;  %v669_v43 = vpop.f32.mrb[3].mxu0 }
 0x1ad   : > { %v729_v44 = vpack.c.bf16 %v669_v43, %v666_v40 }
 0x1af   : > { %1597 = vmatprep.mubr.bf16.mxu1 %v729_v44 }
 0x1b0   : > { %1598 = vmatmul.mubr.bf16.vlgmr.msra.gmra.mrb[0].mxu1 %v730_v42 }
 0x1b1   : > { %v1571_v45 = vpop.f32.mrb[4].mxu0 }
 0x1b2   : > { %v682_v46 = vpop.f32.mrb[5].mxu0 }
 0x1b3   : > { %v1572_v47 = vpop.f32.mrb[6].mxu0 }
 0x1b4   : > { %v732_v48 = vpack.c.bf16 %v1572_v47, %v1571_v45  ;;  %v685_v49 = vpop.f32.mrb[7].mxu0 }
 0x1b5   : > { %v731_v50 = vpack.c.bf16 %v685_v49, %v682_v46 }
 0x1b7   : > { %1601 = vmatprep.mubr.bf16.mxu1 %v731_v50 }
 0x1b8   : > { %1602 = vmatmul.mubr.bf16.gmra.mrb[4].mxu1 %v732_v48 }
 0x1b9   : > { %v1575_v51 = vpop.f32.mrb[8].mxu0 }
 0x1ba   : > { %v698_v52 = vpop.f32.mrb[9].mxu0 }
 0x1bb   : > { %v1576_v53 = vpop.f32.mrb[10].mxu0 }
 0x1bc   : > { %v734_v54 = vpack.c.bf16 %v1576_v53, %v1575_v51  ;;  %v701_v55 = vpop.f32.mrb[11].mxu0 }
 0x1bd   : > { %v733_v56 = vpack.c.bf16 %v701_v55, %v698_v52 }
 0x1bf   : > { %1605 = vmatprep.mubr.bf16.mxu1 %v733_v56 }
 0x1c0   : > { %1606 = vmatmul.mubr.bf16.gmra.mrb[8].mxu1 %v734_v54 }
 0x1c1   : > { %v1579_v57 = vpop.f32.mrb[12].mxu0 }
 0x1c2   : > { %v714_v58 = vpop.f32.mrb[13].mxu0 }
 0x1c3   : > { %v1580_v59 = vpop.f32.mrb[14].mxu0 }
 0x1c4   : > { %v736_v60 = vpack.c.bf16 %v1580_v59, %v1579_v57  ;;  %v717_v61 = vpop.f32.mrb[15].mxu0  ;;  %v1799_v59 = vld [vmem:[%s2361_s30] sm:$0xff]  }
 0x1c5   : > { %v735_v62 = vpack.c.bf16 %v717_v61, %v714_v58  ;;  %v2035_v58 = vmov 0.0   ;;  %v1801_v61 = vld [vmem:[%s2361_s30 + $0x10] sm:$0xff]  }
 0x1c6   : > { %1645 = vmatprep.subr.bf16.mxu1 %v2035_v58  ;;  %1665 = vmatprep.subr.bf16.mxu0 %v2035_v58 }
 0x1c7   : > { %1609 = vmatprep.mubr.bf16.mxu1 %v735_v62  ;;  %v1802_v62 = vld [vmem:[%s2361_s30 + $0x18] sm:$0xff]  }
 0x1c8   : > { %1610 = vmatmul.mubr.bf16.gmra.mrb[12].mxu1 %v736_v60  ;;  %v1800_v60 = vld [vmem:[%s2361_s30 + $0x8] sm:$0xff]  }
 0x1c9   : > { %1661 = vmatprep.mubr.msk.bf16.mxu1 %vm2036_vm0, %v2035_v58 }
 0x283   : > { %v1599_v2 = vpop.f32.mrb[0].mxu1 }
 0x284   : > { %v851_v3 = vadd.f32 %v1599_v2, %v1449_v1  ;;  %v842_v4 = vpop.f32.mrb[1].mxu1 }
 0x285   : > { %v843_v5 = vadd.f32 %v1449_v1, %v842_v4  ;;  %v1600_v6 = vpop.f32.mrb[2].mxu1 }
 0x286   : > { %v854_v7 = vadd.f32 %v1600_v6, %v1449_v1  ;;  %v845_v8 = vpop.f32.mrb[3].mxu1  ;;  %v907_v10 = vmax.f32 %v851_v3, 0.0  ;;  %v1458_v3 = vld [vmem:[%s478_s14] ss:$0 sm:$0xff] }
 0x287   : > { %v846_v9 = vadd.f32 %v1449_v1, %v845_v8  ;;  %v905_v12 = vmax.f32 %v843_v5, 0.0 }
 0x288   : > { %v908_v11 = vmax.f32 %v854_v7, 0.0 }
 0x289   : > { %v906_v13 = vmax.f32 %v846_v9, 0.0 }
 0x28a   : > { %v922_v14 = vpack.c.bf16 %v908_v11, %v907_v10 }
 0x28b   : > { %v921_v15 = vpack.c.bf16 %v906_v13, %v905_v12  ;;  %v1603_v16 = vpop.f32.mrb[4].mxu1 }
 0x28c   : > { %v867_v17 = vadd.f32 %v1603_v16, %v1449_v1  ;;  %v858_v18 = vpop.f32.mrb[5].mxu1 }
 0x28d   : > { %v859_v19 = vadd.f32 %v1449_v1, %v858_v18  ;;  %v1604_v20 = vpop.f32.mrb[6].mxu1  ;;  %1629 = vmatprep.mubr.bf16.mxu0 %v921_v15 }
 0x28e   : > { %v870_v21 = vadd.f32 %v1604_v20, %v1449_v1  ;;  %v861_v22 = vpop.f32.mrb[7].mxu1  ;;  %1630 = vmatmul.mubr.bf16.vlgmr.msra.gmra.mrb[16].mxu0 %v922_v14  ;;  %v911_v24 = vmax.f32 %v867_v17, 0.0 }
 0x28f   : > { %v862_v23 = vadd.f32 %v1449_v1, %v861_v22  ;;  %v909_v26 = vmax.f32 %v859_v19, 0.0  ;;  %1666 = vmatpush3.bf16.msra.mxu0 %v1799_v59 }
 0x290   : > { %v912_v25 = vmax.f32 %v870_v21, 0.0  ;;  %1667 = vmatprep.subr.bf16.mxu0 %v2035_v58 }
 0x291   : > { %v910_v27 = vmax.f32 %v862_v23, 0.0 }
 0x292   : > { %v924_v28 = vpack.c.bf16 %v912_v25, %v911_v24 }
 0x293   : > { %v923_v29 = vpack.c.bf16 %v910_v27, %v909_v26  ;;  %v1607_v30 = vpop.f32.mrb[8].mxu1  ;;  %1668 = vmatpush3.bf16.msra.mxu0 %v1800_v60 }
 0x294   : > { %v883_v31 = vadd.f32 %v1607_v30, %v1449_v1  ;;  %v874_v32 = vpop.f32.mrb[9].mxu1  ;;  %1669 = vmatprep.subr.bf16.mxu0 %v2035_v58 }
 0x295   : > { %v875_v33 = vadd.f32 %v1449_v1, %v874_v32  ;;  %v1608_v34 = vpop.f32.mrb[10].mxu1  ;;  %1633 = vmatprep.mubr.bf16.mxu0 %v923_v29 }
 0x296   : > { %v886_v35 = vadd.f32 %v1608_v34, %v1449_v1  ;;  %v877_v36 = vpop.f32.mrb[11].mxu1  ;;  %1634 = vmatmul.mubr.bf16.gmra.mrb[20].mxu0 %v924_v28  ;;  %v915_v38 = vmax.f32 %v883_v31, 0.0 }
 0x297   : > { %v878_v37 = vadd.f32 %v1449_v1, %v877_v36  ;;  %v913_v40 = vmax.f32 %v875_v33, 0.0  ;;  %1670 = vmatpush3.bf16.msra.mxu0 %v1801_v61 }
 0x298   : > { %v916_v39 = vmax.f32 %v886_v35, 0.0  ;;  %1671 = vmatprep.subr.bf16.mxu0 %v2035_v58 }
 0x299   : > { %v914_v41 = vmax.f32 %v878_v37, 0.0 }
 0x29a   : > { %v926_v42 = vpack.c.bf16 %v916_v39, %v915_v38 }
 0x29b   : > { %v925_v43 = vpack.c.bf16 %v914_v41, %v913_v40  ;;  %v1611_v44 = vpop.f32.mrb[12].mxu1  ;;  %1672 = vmatpush3.bf16.msra.mxu0 %v1802_v62 }
 0x29c   : > { %v899_v45 = vadd.f32 %v1611_v44, %v1449_v1  ;;  %v890_v46 = vpop.f32.mrb[13].mxu1  ;;  %1673 = vmatprep.subr.bf16.mxu0 %v2035_v58  ;;  %v1806_v44 = vld [vmem:[%s2361_s30 + $0x38] sm:$0xff]  }
 0x29d   : > { %v891_v47 = vadd.f32 %v1449_v1, %v890_v46  ;;  %v1612_v48 = vpop.f32.mrb[14].mxu1  ;;  %1637 = vmatprep.mubr.bf16.mxu0 %v925_v43  ;;  %v1113_v43 = vld [vmem:[%s2520_s26] sm:$0xf] }
 0x29e   : > { %v902_v49 = vadd.f32 %v1612_v48, %v1449_v1  ;;  %v893_v50 = vpop.f32.mrb[15].mxu1  ;;  %1638 = vmatmul.mubr.bf16.gmra.mrb[24].mxu0 %v926_v42  ;;  %v919_v52 = vmax.f32 %v899_v45, 0.0 }
 0x29f   : > { %v894_v51 = vadd.f32 %v1449_v1, %v893_v50  ;;  %v917_v54 = vmax.f32 %v891_v47, 0.0  ;;  %1674 = vmatpush3.bf16.msra.mxu0 %v1803_v63  ;;  %v1805_v1 = vld [vmem:[%s2361_s30 + $0x30] sm:$0xff]   ;;  %v1467_v50 = vld [vmem:[%s481_s19] ss:$0 sm:$0xff] }
 0x2a0   : > { %v920_v53 = vmax.f32 %v902_v49, 0.0  ;;  %1675 = vmatprep.subr.bf16.mxu0 %v2035_v58 }
 0x2a1   : > { %v918_v55 = vmax.f32 %v894_v51, 0.0  ;;  %v1154_v51 = vld [vmem:[#allocation11] sm:$0xff] }
 0x2a2   : > { %v928_v56 = vpack.c.bf16 %v920_v53, %v919_v52 }
 0x2a3   : > { %v927_v57 = vpack.c.bf16 %v918_v55, %v917_v54  ;;  %1676 = vmatpush3.bf16.msra.mxu0 %v1804_v0 }
 0x2a4   : > { %1677 = vmatprep.subr.bf16.mxu0 %v2035_v58 }
 0x2a5   : > { %1641 = vmatprep.mubr.bf16.mxu0 %v927_v57 }
 0x2a6   : > { %1642 = vmatmul.mubr.bf16.gmra.mrb[28].mxu0 %v928_v56 }
 0x2a7   : > { %1681 = vmatprep.mubr.msk.bf16.mxu0 %vm2036_vm0, %v2035_v58  ;;  %1678 = vmatpush3.bf16.msra.mxu0 %v1805_v1 }
 0x2a8   : > { %1679 = vmatprep.subr.bf16.mxu0 %v2035_v58 }
 0x2ab   : > { %1680 = vmatpush3.bf16.msra.mxu0 %v1806_v44 }
 0x361   : > { %v1631_v2 = vpop.f32.mrb[16].mxu0 }
 0x362   : > { %v1034_v4 = vpop.f32.mrb[17].mxu0  ;;  %v1043_v6 = vadd.f32 %v1631_v2, %v1458_v3 }
 0x363   : > { %v1632_v5 = vpop.f32.mrb[18].mxu0  ;;  %v1035_v9 = vadd.f32 %v1458_v3, %v1034_v4 }
 0x364   : > { %v1046_v7 = vadd.f32 %v1632_v5, %v1458_v3  ;;  %v1037_v8 = vpop.f32.mrb[19].mxu0 }
 0x365   : > { %v1038_v10 = vadd.f32 %v1458_v3, %v1037_v8 }
 0x366   : > { %v1098_v11 = vpack.c.bf16 %v1046_v7, %v1043_v6 }
 0x367   : > { %v1097_v12 = vpack.c.bf16 %v1038_v10, %v1035_v9 }
 0x368   : > { %1106 = vst [vmem:[#allocation2 + $0x8] sm:$0xff] %v1098_v11 }
 0x369   : > { %1105 = vst [vmem:[#allocation2] sm:$0xff] %v1097_v12  ;;  %v1635_v13 = vpop.f32.mrb[20].mxu0  ;;  %1646 = vmatpush3.bf16.msra.mxu1 %v1097_v12 }
 0x36a   : > { %v1050_v14 = vpop.f32.mrb[21].mxu0  ;;  %1647 = vmatprep.subr.bf16.mxu1 %v2035_v58  ;;  %v1059_v16 = vadd.f32 %v1635_v13, %v1458_v3 }
 0x36b   : > { %v1636_v15 = vpop.f32.mrb[22].mxu0  ;;  %v1051_v19 = vadd.f32 %v1458_v3, %v1050_v14 }
 0x36c   : > { %v1062_v17 = vadd.f32 %v1636_v15, %v1458_v3  ;;  %v1053_v18 = vpop.f32.mrb[23].mxu0 }
 0x36d   : > { %v1054_v20 = vadd.f32 %v1458_v3, %v1053_v18  ;;  %1648 = vmatpush3.bf16.msra.mxu1 %v1098_v11 }
 0x36e   : > { %v1100_v21 = vpack.c.bf16 %v1062_v17, %v1059_v16  ;;  %1649 = vmatprep.subr.bf16.mxu1 %v2035_v58 }
 0x36f   : > { %v1099_v22 = vpack.c.bf16 %v1054_v20, %v1051_v19 }
 0x370   : > { %1108 = vst [vmem:[#allocation2 + $0x18] sm:$0xff] %v1100_v21 }
 0x371   : > { %1107 = vst [vmem:[#allocation2 + $0x10] sm:$0xff] %v1099_v22  ;;  %v1639_v23 = vpop.f32.mrb[24].mxu0  ;;  %1650 = vmatpush3.bf16.msra.mxu1 %v1099_v22 }
 0x372   : > { %v1066_v24 = vpop.f32.mrb[25].mxu0  ;;  %1651 = vmatprep.subr.bf16.mxu1 %v2035_v58  ;;  %v1075_v26 = vadd.f32 %v1639_v23, %v1458_v3 }
 0x373   : > { %v1640_v25 = vpop.f32.mrb[26].mxu0  ;;  %v1067_v29 = vadd.f32 %v1458_v3, %v1066_v24 }
 0x374   : > { %v1078_v27 = vadd.f32 %v1640_v25, %v1458_v3  ;;  %v1069_v28 = vpop.f32.mrb[27].mxu0 }
 0x375   : > { %v1070_v30 = vadd.f32 %v1458_v3, %v1069_v28  ;;  %1652 = vmatpush3.bf16.msra.mxu1 %v1100_v21 }
 0x376   : > { %v1102_v31 = vpack.c.bf16 %v1078_v27, %v1075_v26  ;;  %1653 = vmatprep.subr.bf16.mxu1 %v2035_v58 }
 0x377   : > { %v1101_v32 = vpack.c.bf16 %v1070_v30, %v1067_v29 }
 0x378   : > { %1110 = vst [vmem:[#allocation2 + $0x28] sm:$0xff] %v1102_v31 }
 0x379   : > { %1109 = vst [vmem:[#allocation2 + $0x20] sm:$0xff] %v1101_v32  ;;  %v1643_v33 = vpop.f32.mrb[28].mxu0  ;;  %1654 = vmatpush3.bf16.msra.mxu1 %v1101_v32 }
 0x37a   : > { %v1082_v34 = vpop.f32.mrb[29].mxu0  ;;  %1655 = vmatprep.subr.bf16.mxu1 %v2035_v58  ;;  %v1091_v36 = vadd.f32 %v1643_v33, %v1458_v3 }
 0x37b   : > { %v1644_v35 = vpop.f32.mrb[30].mxu0  ;;  %v1083_v39 = vadd.f32 %v1458_v3, %v1082_v34 }
 0x37c   : > { %v1094_v37 = vadd.f32 %v1644_v35, %v1458_v3  ;;  %v1085_v38 = vpop.f32.mrb[31].mxu0 }
 0x37d   : > { %v1086_v40 = vadd.f32 %v1458_v3, %v1085_v38  ;;  %1656 = vmatpush3.bf16.msra.mxu1 %v1102_v31 }
 0x37e   : > { %v1104_v41 = vpack.c.bf16 %v1094_v37, %v1091_v36  ;;  %1657 = vmatprep.subr.bf16.mxu1 %v2035_v58 }
 0x37f   : > { %v1103_v42 = vpack.c.bf16 %v1086_v40, %v1083_v39 }
 0x380   : > { %1112 = vst [vmem:[#allocation2 + $0x38] sm:$0xff] %v1104_v41 }
 0x381   : > { %1111 = vst [vmem:[#allocation2 + $0x30] sm:$0xff] %v1103_v42  ;;  %1658 = vmatpush3.bf16.msra.mxu1 %v1103_v42 }
 0x382   : > { %1659 = vmatprep.subr.bf16.mxu1 %v2035_v58 }
 0x385   : > { %1660 = vmatpush3.bf16.msra.mxu1 %v1104_v41 }
 0x388   : > { %1662 = vmatmul.mubr.bf16.vlgmr.msra.gmra.mrb[16].mxu1 %v1113_v43 }
 0x45b   : > { %v1148_v45 = vpop.f32.mrb[16].mxu1 }
 0x45c   : > { %v1155_v46 = vpack.c.bf16 %v1148_v45, %v1148_v45  ;;  %v1663_v47 = vpop.f32.mrb[17].mxu1 }
 0x45d   : > { %v1151_v48 = vpop.f32.mrb[18].mxu1 }
 0x45e   : > { %v1664_v49 = vpop.f32.mrb[19].mxu1  ;;  %1682 = vmatmul.mubr.bf16.vlgmr.msra.gmra.mrb[32].mxu0 %v1155_v46 }
 0x531   : > { %v1261_v52 = vpop.f32.mrb[32].mxu0 }
 0x532   : > { %v1262_v53 = vadd.f32 %v1467_v50, %v1261_v52  ;;  %v1683_v54 = vpop.f32.mrb[33].mxu0 }
 0x533   : > { %v1264_v55 = vpop.f32.mrb[34].mxu0 }
 0x534   : > { %v1267_v56 = vadd.f32 %v1262_v53, %v1154_v51  ;;  %v1684_v57 = vpop.f32.mrb[35].mxu0 }
 0x536   : > { %1268 = vst [vmem:[#allocation11] sm:$0xff] %v1267_v56 }
 0x537   : > { %1966 = shalt.err (!%p1963_p5)
}
 0x538   : > { %s2521_s2 = sld [smem:[#allocation22_spill]] }
 0x53e   : > { %s1967_s9 = scalar_lea.hbm %s2521_s2, 128 }
 0x53f   : > { %p1968_p10 = scmp.ne.s32.totalorder %s2521_s2, %s1967_s9  ;;  %p1973_p12 = scmp.lt.u32.totalorder %s1967_s9, %s2521_s2 }
 0x541   : > { %p1969_p1 = pnand %p1968_p10, %p1725_p4 }
 0x543   : > { %p1970_p3 = pneg %p1969_p1 }
 0x545   : > { %p1975_p2 = pnand %p1973_p12, %p1970_p3 }
 0x547   : > { %1978 = shalt.err (!%p1975_p2)
}
 0x548   : > { %1700 = dma.vmem_to_hbm [thread:$0]  (%p1725_p4), %s1277_s18, 128, %s2521_s2, [#allocation5]  }
 0x549   : > { %2008 = dma.done.wait (%p1725_p4), [#allocation5], 128  }
 0x54a   : > { %2010 = vsyncadd (%p1725_p4), [#allocation5], 4294967168 }
 0x54b PF: > { %s2522_s12 = sld [smem:[#allocation17_spill]]  ;;  %s2523_s0 = sld [smem:[#allocation16_spill]] }
 0x54c   : > { %s2524_s11 = sld [smem:[#allocation18_spill]]  ;;  %s2525_s30 = smov %s2017_s10 }
 0x551   : > { %p19_p6 = scmp.ge.s32.totalorder %s2522_s12, 4   ;;  %s2526_s10 = smov %s2523_s0 }
 0x553   :  { %21 = sbr.rel (!%p19_p6) target bundleno = 9 (0x9), region = 135 }
 0x55a   :  { %1289 = vsyncpa [#allocation4], 1 }
 0x55b   :  { %1291 = vsyncpa [#allocation4 + $0x1], 1 }
 0x55c   :  { %1292 = vsyncpa [#allocation7], 1 }
 0x55d   :  { %1293 = vsyncpa [#allocation5], 1 }
 0x55e   :  { %1295 = vsyncpa [#allocation5 + $0x1], 1 }

</bundles_post_ra>
